<compile_context>
chip_gen: v6e
topology: v6e:2x2x1
jax: 0.10.0
libtpu: 0.0.40
codegen_flags: <defaults>
</compile_context>

<pallas_src>
import functools

import jax
import jax.numpy as jnp
from jax.experimental import pallas as pl
from jax.experimental.pallas import tpu as pltpu

_LANE = 128
_HW_TILE_BUDGET_BYTES = 2 * 1024 * 1024   # per output block (conservative for v5e/v7x)
_SMEM_C2_MAX = 64                         # above this, use vectorized VMEM broadcast


def _choose_hw_tile(hw, c_out, itemsize):
    """Largest lane-aligned divisor of `hw` keeping one output block under budget."""
    if hw % _LANE != 0:
        return hw          # must use full extent (block dim == array dim is allowed)
    t = hw
    while c_out * t * itemsize > _HW_TILE_BUDGET_BYTES and t % (2 * _LANE) == 0:
        t //= 2
    return t


# ---------------------------------------------------------------------------
# Kernels (all operate on lane-dense (B, C, H*W) views)
# ---------------------------------------------------------------------------

def _concat_kernel(C1, x1_ref, x2_ref, out_ref):
    """Same-shape path: plain channel concat."""
    out_ref[:, :C1, :] = x1_ref[...].astype(out_ref.dtype)
    out_ref[:, C1:, :] = x2_ref[...].astype(out_ref.dtype)


def _concat_bcast_smem_kernel(C1, C2, hw_t, x2_smem, x1_ref, out_ref):
    """Broadcast path (small C2): x2 scalars live in SMEM, splat on the VPU."""
    b = pl.program_id(0)
    out_ref[:, :C1, :] = x1_ref[...].astype(out_ref.dtype)
    base = b * C2
    for c in range(C2):                                   # C2 is small & static
        out_ref[:, C1 + c, :] = jnp.full((1, hw_t), x2_smem[base + c], out_ref.dtype)


def _concat_bcast_vmem_kernel(C1, C2, hw_t, x1_ref, x2_ref, out_ref):
    """Broadcast path (large C2): x2 block is (1, C2, 1) in VMEM, lane-splat it."""
    out_ref[:, :C1, :] = x1_ref[...].astype(out_ref.dtype)
    x2b = jnp.broadcast_to(x2_ref[...], (1, C2, hw_t)).astype(out_ref.dtype)
    out_ref[:, C1:, :] = x2b


# ---------------------------------------------------------------------------
# Wrapper
# ---------------------------------------------------------------------------

def discriminator_forward(x1, x2):
    """Reproduces Discriminator.forward(x1, x2) -> (y, x)."""
    B1, C1, H1, W1 = x1.shape
    B2, C2, H2, W2 = x2.shape

    shapes_differ = tuple(x1.shape) != tuple(x2.shape)

    if B2 != B1:
        raise ValueError(f"batch dims must match for cat(dim=1): {B1} vs {B2}")
    if shapes_differ:
        out_h, out_w = H2 * H1, W2 * W1
    else:
        out_h, out_w = H2, W2
    if (out_h, out_w) != (H1, W1):
        raise ValueError(
            "torch.cat(dim=1) needs matching spatial dims: x1 has "
            f"{(H1, W1)} but x2 after repeat([1,1,{H1},{W1}]) has {(out_h, out_w)}")

    HW = H1 * W1
    C_out = C1 + C2
    itemsize = jnp.dtype(x1.dtype).itemsize
    hw_t = _choose_hw_tile(HW, C_out, itemsize)
    n_hw = HW // hw_t

    # Lane-dense contiguous (free) views.
    x1_l = x1.reshape(B1, C1, HW)
    out_shape = jax.ShapeDtypeStruct((B1, C_out, HW), x1.dtype)
    cparams = pltpu.CompilerParams(
        dimension_semantics=("parallel", "parallel"),
        vmem_limit_bytes=32 * 1024 * 1024,
    )

    x1_spec = pl.BlockSpec((1, C1, hw_t), lambda b, s: (b, 0, s))
    out_spec = pl.BlockSpec((1, C_out, hw_t), lambda b, s: (b, 0, s))

    if not shapes_differ:
        # x2 is a full feature map: stream it just like x1.
        x2_l = x2.reshape(B1, C2, HW).astype(x1.dtype)
        x_l = pl.pallas_call(
            functools.partial(_concat_kernel, C1),
            out_shape=out_shape,
            grid_spec=pltpu.PrefetchScalarGridSpec(
                num_scalar_prefetch=0,
                grid=(B1, n_hw),
                in_specs=[x1_spec,
                          pl.BlockSpec((1, C2, hw_t), lambda b, s: (b, 0, s))],
                out_specs=out_spec,
            ),
            compiler_params=cparams,
        )(x1_l, x2_l)
    elif C2 <= _SMEM_C2_MAX:
        # x2 is (B, C2, 1, 1): pass its scalars via SMEM and broadcast in-register
        # -- removes the x2 DMA stream entirely.
        x2_flat = x2.reshape(B1 * C2).astype(jnp.float32)
        x_l = pl.pallas_call(
            functools.partial(_concat_bcast_smem_kernel, C1, C2, hw_t),
            out_shape=out_shape,
            grid_spec=pltpu.PrefetchScalarGridSpec(
                num_scalar_prefetch=0,
                grid=(B1, n_hw),
                in_specs=[pl.BlockSpec(memory_space=pltpu.MemorySpace.SMEM),
                          x1_spec],
                out_specs=out_spec,
            ),
            compiler_params=cparams,
        )(x2_flat, x1_l)
    else:
        # Large C2: vectorized lane-splat of a (1, C2, 1) VMEM block (DMA'd only
        # when the batch index changes, since the block index is constant in s).
        x2_l = x2.reshape(B1, C2, 1).astype(x1.dtype)
        x_l = pl.pallas_call(
            functools.partial(_concat_bcast_vmem_kernel, C1, C2, hw_t),
            out_shape=out_shape,
            grid_spec=pltpu.PrefetchScalarGridSpec(
                num_scalar_prefetch=0,
                grid=(B1, n_hw),
                in_specs=[x1_spec,
                          pl.BlockSpec((1, C2, 1), lambda b, s: (b, 0, 0))],
                out_specs=out_spec,
            ),
            compiler_params=cparams,
        )(x1_l, x2_l)

    x = x_l.reshape(B1, C_out, H1, W1)
    # predict(): net and linear are identity -> y is just the flat view of x.
    y = x_l.reshape(B1, C_out * HW)
    return y, x


# ---------------------------------------------------------------------------
# Pure-JAX reference mirroring the PyTorch code
# ---------------------------------------------------------------------------

def _reference_forward(x1, x2):
    if tuple(x1.shape) != tuple(x2.shape):
        x2 = jnp.tile(x2, (1, 1, x1.shape[2], x1.shape[3]))
    x = jnp.concatenate((x1, x2.astype(x1.dtype)), axis=1)
    y = x.reshape(x.shape[0], -1)
    return y, x


if __name__ == "__main__":
    key = jax.random.PRNGKey(0)
    k1, k2, k3 = jax.random.split(key, 3)

    B, C1, H, W = 2, 4, 16, 16
    C2 = 4
    x1 = jax.random.normal(k1, (B, C1, H, W), dtype=jnp.float32)
    x2_small = jax.random.normal(k2, (B, C2, 1, 1), dtype=jnp.float32)   # repeat path
    x2_full = jax.random.normal(k3, (B, C2, H, W), dtype=jnp.float32)    # same-shape path

    # Path 1 (typical use): x2 is a 1x1 map -> spatial broadcast + channel concat.
    y, x = discriminator_forward(x1, x2_small)
    jax.block_until_ready((y, x))
    y_ref, x_ref = _reference_forward(x1, x2_small)
    assert x.shape == (B, C1 + C2, H, W)
    assert y.shape == (B, (C1 + C2) * H * W)
    assert jnp.allclose(x, x_ref), "broadcast/concat mismatch"
    assert jnp.allclose(y, y_ref), "flatten mismatch"

    # Path 2: shapes already equal -> plain channel concat.
    y2, x2c = discriminator_forward(x1, x2_full)
    jax.block_until_ready((y2, x2c))
    y2_ref, x2c_ref = _reference_forward(x1, x2_full)
    assert jnp.allclose(x2c, x2c_ref), "same-shape concat mismatch"
    assert jnp.allclose(y2, y2_ref), "same-shape flatten mismatch"

    print("KERNEL_OK")
</pallas_src>

<mosaic_0001>
module attributes {stable_mosaic.version = 11 : i64} {
  func.func @_concat_bcast_smem_kernel(%arg0: i32, %arg1: i32, %arg2: memref<8xf32, #tpu.memory_space<smem>>, %arg3: memref<1x4x256xf32, #tpu.memory_space<vmem>>, %arg4: memref<1x8x256xf32, #tpu.memory_space<vmem>>) attributes {dimension_semantics = [#tpu.dimension_semantics<parallel>, #tpu.dimension_semantics<parallel>], iteration_bounds = array<i64: 2, 1>, scalar_prefetch = 0 : i64, scratch_operands = 0 : i64, tpu.core_type = #tpu.core_type<tc>, window_params = [{transform_indices = @transform_0, window_bounds = array<i64: 8>}, {transform_indices = @transform_1, window_bounds = array<i64: 1, 4, 256>}, {transform_indices = @transform_2, window_bounds = array<i64: 1, 8, 256>}]} {
    %c0 = arith.constant 0 : index
    %c0_0 = arith.constant 0 : index
    %c0_1 = arith.constant 0 : index
    %0 = vector.load %arg3[%c0, %c0_0, %c0_1] : memref<1x4x256xf32, #tpu.memory_space<vmem>>, vector<1x4x256xf32>
    %c0_2 = arith.constant 0 : index
    %c0_3 = arith.constant 0 : index
    %c0_4 = arith.constant 0 : index
    %1 = vector.load %arg4[%c0_2, %c0_3, %c0_4] : memref<1x8x256xf32, #tpu.memory_space<vmem>>, vector<1x4x256xf32>
    tpu.vector_store %arg4[%c0_2, %c0_3, %c0_4], %0 {strides = array<i32>} : memref<1x8x256xf32, #tpu.memory_space<vmem>>, vector<1x4x256xf32>,
    %c4_i32 = arith.constant 4 : i32
    %2 = arith.muli %arg0, %c4_i32 : i32
    %c0_i32 = arith.constant 0 : i32
    %3 = arith.addi %2, %c0_i32 : i32
    %4 = arith.index_cast %3 : i32 to index
    %5 = memref.load %arg2[%4] : memref<8xf32, #tpu.memory_space<smem>>
    %6 = vector.broadcast %5 : f32 to vector<1x256xf32>
    %c0_5 = arith.constant 0 : index
    %c4 = arith.constant 4 : index
    %c0_6 = arith.constant 0 : index
    %7 = vector.load %arg4[%c0_5, %c4, %c0_6] : memref<1x8x256xf32, #tpu.memory_space<vmem>>, vector<1x1x256xf32>
    %8 = vector.shape_cast %7 : vector<1x1x256xf32> to vector<1x256xf32>
    %9 = vector.shape_cast %6 : vector<1x256xf32> to vector<1x1x256xf32>
    tpu.vector_store %arg4[%c0_5, %c4, %c0_6], %9 {strides = array<i32>} : memref<1x8x256xf32, #tpu.memory_space<vmem>>, vector<1x1x256xf32>,
    %c1_i32 = arith.constant 1 : i32
    %10 = arith.addi %2, %c1_i32 : i32
    %11 = arith.index_cast %10 : i32 to index
    %12 = memref.load %arg2[%11] : memref<8xf32, #tpu.memory_space<smem>>
    %13 = vector.broadcast %12 : f32 to vector<1x256xf32>
    %c0_7 = arith.constant 0 : index
    %c5 = arith.constant 5 : index
    %c0_8 = arith.constant 0 : index
    %14 = vector.load %arg4[%c0_7, %c5, %c0_8] : memref<1x8x256xf32, #tpu.memory_space<vmem>>, vector<1x1x256xf32>
    %15 = vector.shape_cast %14 : vector<1x1x256xf32> to vector<1x256xf32>
    %16 = vector.shape_cast %13 : vector<1x256xf32> to vector<1x1x256xf32>
    tpu.vector_store %arg4[%c0_7, %c5, %c0_8], %16 {strides = array<i32>} : memref<1x8x256xf32, #tpu.memory_space<vmem>>, vector<1x1x256xf32>,
    %c2_i32 = arith.constant 2 : i32
    %17 = arith.addi %2, %c2_i32 : i32
    %18 = arith.index_cast %17 : i32 to index
    %19 = memref.load %arg2[%18] : memref<8xf32, #tpu.memory_space<smem>>
    %20 = vector.broadcast %19 : f32 to vector<1x256xf32>
    %c0_9 = arith.constant 0 : index
    %c6 = arith.constant 6 : index
    %c0_10 = arith.constant 0 : index
    %21 = vector.load %arg4[%c0_9, %c6, %c0_10] : memref<1x8x256xf32, #tpu.memory_space<vmem>>, vector<1x1x256xf32>
    %22 = vector.shape_cast %21 : vector<1x1x256xf32> to vector<1x256xf32>
    %23 = vector.shape_cast %20 : vector<1x256xf32> to vector<1x1x256xf32>
    tpu.vector_store %arg4[%c0_9, %c6, %c0_10], %23 {strides = array<i32>} : memref<1x8x256xf32, #tpu.memory_space<vmem>>, vector<1x1x256xf32>,
    %c3_i32 = arith.constant 3 : i32
    %24 = arith.addi %2, %c3_i32 : i32
    %25 = arith.index_cast %24 : i32 to index
    %26 = memref.load %arg2[%25] : memref<8xf32, #tpu.memory_space<smem>>
    %27 = vector.broadcast %26 : f32 to vector<1x256xf32>
    %c0_11 = arith.constant 0 : index
    %c7 = arith.constant 7 : index
    %c0_12 = arith.constant 0 : index
    %28 = vector.load %arg4[%c0_11, %c7, %c0_12] : memref<1x8x256xf32, #tpu.memory_space<vmem>>, vector<1x1x256xf32>
    %29 = vector.shape_cast %28 : vector<1x1x256xf32> to vector<1x256xf32>
    %30 = vector.shape_cast %27 : vector<1x256xf32> to vector<1x1x256xf32>
    tpu.vector_store %arg4[%c0_11, %c7, %c0_12], %30 {strides = array<i32>} : memref<1x8x256xf32, #tpu.memory_space<vmem>>, vector<1x1x256xf32>,
    return
  }
  func.func @transform_0(%arg0: i32, %arg1: i32) -> i32 {
    %c0_i32 = arith.constant 0 : i32
    %c0_i32_0 = arith.constant 0 : i32
    return %c0_i32 : i32
  }
  func.func @transform_1(%arg0: i32, %arg1: i32) -> (i32, i32, i32) {
    %c0_i32 = arith.constant 0 : i32
    %c0_i32_0 = arith.constant 0 : i32
    return %arg0, %c0_i32, %arg1 : i32, i32, i32
  }
  func.func @transform_2(%arg0: i32, %arg1: i32) -> (i32, i32, i32) {
    %c0_i32 = arith.constant 0 : i32
    %c0_i32_0 = arith.constant 0 : i32
    return %arg0, %c0_i32, %arg1 : i32, i32, i32
  }
}

</mosaic_0001>

<bundles_post_ra>
// kernel: tpu_custom_call.1
= control target key start
LH: loop header
LB: loop body
LE: loop exit
PB: predicated region body
PF: predicated region fallthrough
CT: control target
= control target key end

     0   :  { %7 = vsyncpa [#allocation5], 0  ;;  %s753_s0 = inlined_call_operand.hbm [shape: f32[8], index: 0, kind: input, shape index: {}]   ;;  %s754_s1 = inlined_call_operand.hbm [shape: f32[2,4,256], index: 1, kind: input, shape index: {}]   ;;  %s755_s2 = inlined_call_operand.hbm [shape: f32[2,8,256], index: 2, kind: output, shape index: {}]  }
   0x1   :  { %8 = vsyncpa [#allocation3], 0 }
   0x2   :  { %10 = vsyncpa [#allocation3 + $0x1], 0 }
   0x3   :  { %11 = vsyncpa [#allocation4], 0 }
   0x4   :  { %13 = vsyncpa [#allocation4 + $0x1], 0  ;;  %s580_s9 = smov 0   ;;  %s582_s10 = smov 0  }
   0x5   :  { %s584_s11 = smov 0   ;;  %s586_s12 = smov 0  }
   0x6   :  { %s588_s13 = smov 0   ;;  %s590_s14 = smov 0  }
   0x7 LB: > { %s339_s15 = sadd.s32 4294967295, %s560_s14   ;;  %s340_s16 = sadd.s32 4294967294, %s560_s14   ;;  %s560_s14 = sphi %s590_s14, %s19_s14   ;;  %s556_s13 = sphi %s588_s13, %s772_s13   ;;  %s552_s12 = sphi %s586_s12, %s771_s12   ;;  %s548_s11 = sphi %s584_s11, %s770_s11   ;;  %s544_s10 = sphi %s582_s10, %s769_s10   ;;  %s540_s9 = sphi %s580_s9, %s768_s9  }
   0x8   : > { %p74_p0 = scmp.ne.s32.totalorder %s544_s10, %s540_s9  ;;  %p614_p1 = scmp.eq.s32.totalorder %s339_s15, 0 }
   0x9   : > { %p618_p2 = scmp.eq.s32.totalorder %s339_s15, 1  ;;  %p106_p3 = scmp.eq.s32.totalorder %s340_s16, 1 }
   0xa   : > { %p624_p4 = por %p614_p1, %p74_p0  ;;  %p341_p5 = scmp.ge.s32.totalorder %s560_s14, 1 }
   0xb   : > { %p629_p6 = por %p106_p3, %p74_p0  ;;  %p113_p7 = scmp.lt.s32.totalorder %s560_s14, 3 }
   0xc   : > { %s31_s22 = sadd.s32 1, %s556_s13  ;;  %s61_s23 = sadd.s32 1, %s548_s11 }
   0xd   : > { %s760_s20 = scalar_select %p629_p6, 1, 0 }
   0xe   : > { %p634_p8 = pnand %p341_p5, %p113_p7  ;;  %p33_p12 = scmp.ge.s32.totalorder %s31_s22, 2 }
   0xf   : > { %p68_p13 = scmp.ne.s32.totalorder %s548_s11, %s544_s10  ;;  %p69_p0 = scmp.eq.s32.totalorder %s560_s14, 0 }
  0x10   : > { %p371_p10 = pneg %p634_p8  ;;  %s562_s24 = smov [#allocation2]  }
  0x11   : > { %s774_s22 = smov (%p33_p12, %s31_s22), 0  ;;  %p653_p3 = por %p69_p0, %p68_p13 }
  0x12   : > { %p372_p11 = pnand %p371_p10, %p614_p1  ;;  %p659_p5 = por %p618_p2, %p68_p13 }
  0x13   : > { %s56_s29 = ssub.s32 %s556_s13, %s774_s22  ;;  %p384_p7 = scmp.lt.s32.totalorder %s560_s14, 2 }
  0x14   : > { %374 = dma.hbm_to_smem (!%p372_p11), %s753_s0, 16, %s562_s24, [#allocation5]  }
  0x15   : > { %s763_s28 = scalar_select %p659_p5, 1, 0 }
  0x16   : > { %p59_p10 = scmp.eq.s32.totalorder %s56_s29, 0  ;;  %s135_s30 = sand.u32 1, %s548_s11  }
  0x17   : > { %s344_s3 = sshll.u32 %s135_s30, 3  ;;  %s361_s5 = sshll.u32 %s556_s13, 7 }
  0x18   : > { %s668_s4 = scalar_select %p59_p10, %s548_s11, %s61_s23  }
  0x19   : > { %s147_s8 = scalar_lea.hbm %s754_s1, %s361_s5  ;;  %s139_s15 = scalar_lea.vmem [#allocation6], %s344_s3 }
  0x1a   : > { %s149_s16 = sshll.u32 %s139_s15, 4  ;;  %p676_p2 = pnand %p384_p7, %p653_p3  ;;  %s150_s16 = int_to_ptr.vmem [resolvable:$true] %s149_s16 }
  0x1b   : > { %s136_s24 = scalar_lea.sflag [#allocation3], %s135_s30  ;;  %s461_s25 = scalar_lea.vmem %s150_s16, 128 }
  0x1c   : > { %p450_p11 = pneg %p676_p2  ;;  %p462_p12 = scmp.ne.s32.totalorder %s150_s16, %s461_s25 }
  0x1d   : > { %s563_s23 = smov [#allocation6]  }
  0x1e   : > { %p464_p13 = pnand %p462_p12, %p450_p11  ;;  %s466_s26 = sshll.u32 %s563_s23, 4  ;;  %s467_s26 = int_to_ptr.vmem [resolvable:$false] %s466_s26 }
  0x1f   : > { %s468_s29 = scalar_lea.vmem %s467_s26, 256  ;;  %p469_p10 = scmp.lt.s32.totalorder %s150_s16, %s467_s26 }
  0x20   : > { %p465_p0 = pneg %p464_p13  ;;  %p470_p9 = scmp.lt.s32.totalorder %s468_s29, %s461_s25 }
  0x22   : > { %p471_p6 = por %p470_p9, %p469_p10 }
  0x24   : > { %p472_p5 = pnand %p471_p6, %p465_p0 }
  0x26   : > { %475 = shalt.err (!%p472_p5)
}
  0x27   : > { %378 = dma.hbm_to_vmem [thread:$0]  (!%p676_p2), %s147_s8, 128, %s150_s16, %s136_s24  }
  0x28   : > { %158 = sbr.rel (%p634_p8) target bundleno = 81 (0x51), region = 28 }
  0x2d   : > { %527 = dma.done.wait (%p614_p1), [#allocation5], 16  }
  0x2e   : > { %529 = vsyncadd (%p614_p1), [#allocation5], 4294967280  ;;  %s691_s27 = sand.u32 1, %s544_s10  }
  0x2f   : > { %s349_s30 = sshll.u32 %s691_s27, 3  ;;  %s165_s3 = scalar_lea.sflag [#allocation3], %s691_s27 }
  0x30   : > { %s168_s5 = scalar_lea.vmem [#allocation6], %s349_s30 }
  0x31   : > { %531 = dma.done.wait (%p624_p4), %s165_s3, 128  }
  0x32   : > { %533 = vsyncadd (%p624_p4), %s165_s3, 4294967168 }
  0x33   : > { %173 = sfence }
  0x34   : > { %s350_s21 = sshll.u32 %s691_s27, 4  ;;  %v192_v0 = vld [vmem:[%s168_s5] sm:$0xff]  ;;  %s351_s17 = sshll.u32 %s552_s12, 2  ;;  %v201_v2 = vlaneseq }
  0x35   : > { %v194_v1 = vcombine.high %v192_v0, %v192_v0  ;;  %s199_s6 = sld [smem:[#allocation2 + %s351_s17]]  ;;  %s189_s7 = scalar_lea.vmem [#allocation7], %s350_s21 }
  0x36   : > { %196 = vst [vmem:[%s189_s7] sm:$0xf] %v192_v0  ;;  %s208_s8 = sadd.s32 1, %s351_s17  ;;  %s214_s15 = sadd.s32 2, %s351_s17  ;;  %vm203_vm0 = vcmp.lt.s32.totalorder %v201_v2, 256 }
  0x37   : > { %197 = vst [vmem:[%s189_s7 + $0x8] sm:$0xf] %v194_v1  ;;  %s209_s16 = sld [smem:[#allocation2 + %s208_s8]]  ;;  %s220_s18 = sadd.s32 3, %s351_s17 }
  0x38   : > { %s215_s19 = sld [smem:[#allocation2 + %s214_s15]]  ;;  %s362_s25 = sshll.u32 %s552_s12, 8 }
  0x39   : > { %s221_s24 = sld [smem:[#allocation2 + %s220_s18]]  ;;  %s243_s23 = sshll.u32 %s189_s7, 4  ;;  %s707_s23 = int_to_ptr.vmem [resolvable:$true] %s243_s23 }
  0x3a   : > { %s705_s30 = scalar_lea.hbm %s755_s2, %s362_s25  ;;  %s227_s3 = scalar_lea.sflag [#allocation4], %s691_s27 }
  0x3b   : > { %v200_v3 = vstv %s199_s6  ;;  %s476_s12 = scalar_lea.vmem %s707_s23, 256  ;;  %p765_p4 = scmp.ne.s32.totalorder %s763_s28, 0 }
  0x3c   : > { %352 = vst.msk [vmem:[%s189_s7 + $0x4] ss:$8 sm:$0x3] %vm203_vm0, %v200_v3  ;;  %p477_p1 = scmp.ne.s32.totalorder %s707_s23, %s476_s12  ;;  %s564_s5 = smov [#allocation7]  }
  0x3d   : > { %v210_v4 = vstv %s209_s16  ;;  %s480_s21 = sshll.u32 %s564_s5, 4  ;;  %s481_s21 = int_to_ptr.vmem [resolvable:$false] %s480_s21 }
  0x3e   : > { %353 = vst.msk [vmem:[%s189_s7 + $0x5] ss:$8 sm:$0x3] %vm203_vm0, %v210_v4  ;;  %v216_v5 = vstv %s215_s19  ;;  %p478_p6 = pnand %p477_p1, %p765_p4  ;;  %s482_s17 = scalar_lea.vmem %s481_s21, 512 }
  0x3f   : > { %354 = vst.msk [vmem:[%s189_s7 + $0x6] ss:$8 sm:$0x3] %vm203_vm0, %v216_v5  ;;  %v222_v6 = vstv %s221_s24  ;;  %p483_p9 = scmp.lt.s32.totalorder %s707_s23, %s481_s21  ;;  %p484_p3 = scmp.lt.s32.totalorder %s482_s17, %s476_s12 }
  0x40   : > { %355 = vst.msk [vmem:[%s189_s7 + $0x7] ss:$8 sm:$0x3] %vm203_vm0, %v222_v6  ;;  %p479_p8 = pneg %p478_p6 }
  0x41   : > { %p485_p5 = por %p484_p3, %p483_p9 }
  0x43   : > { %p486_p7 = pnand %p485_p5, %p479_p8 }
  0x45   : > { %489 = shalt.err (!%p486_p7)
}
  0x46   : > { %s490_s6 = scalar_lea.hbm %s705_s30, 256  ;;  %s494_s8 = scalar_lea.hbm %s755_s2, 512 }
  0x47   : > { %p491_p2 = scmp.ne.s32.totalorder %s705_s30, %s490_s6  ;;  %p495_p13 = scmp.lt.s32.totalorder %s705_s30, %s755_s2 }
  0x48   : > { %p496_p0 = scmp.lt.s32.totalorder %s494_s8, %s490_s6 }
  0x49   : > { %p492_p11 = pnand %p491_p2, %p765_p4 }
  0x4a   : > { %p497_p10 = por %p496_p0, %p495_p13 }
  0x4b   : > { %p493_p12 = pneg %p492_p11 }
  0x4d   : > { %p498_p1 = pnand %p497_p10, %p493_p12 }
  0x4f   : > { %501 = shalt.err (!%p498_p1)
}
  0x50   : > { %369 = dma.vmem_to_hbm [thread:$0]  (%p765_p4), %s707_s23, 256, %s705_s30, %s227_s3  }
  0x51 PF: > { %s255_s18 = sand.u32 1, %s540_s9   ;;  %p766_p6 = scmp.ne.s32.totalorder %s760_s20, 0 }
  0x52   : > { %p767_p8 = scmp.ge.s32.totalorder %s560_s14, 2  ;;  %s256_s19 = scalar_lea.sflag [#allocation4], %s255_s18 }
  0x54   : > { %p380_p9 = pnand %p767_p8, %p766_p6 }
  0x56   : > { %p381_p3 = pneg %p380_p9 }
  0x58   : > { %535 = dma.done.wait (%p381_p3), %s256_s19, 256  }
  0x59   : > { %537 = vsyncadd (%p381_p3), %s256_s19, 4294967040  ;;  %s19_s14 = sadd.s32 1, %s560_s14   ;;  %s768_s9 = smov %s544_s10 }
  0x5a   : > { %p16_p5 = scmp.ge.s32.totalorder %s19_s14, 4   ;;  %s769_s10 = smov %s548_s11 }
  0x5b   : > { %s770_s11 = smov %s668_s4  ;;  %s771_s12 = smov %s556_s13 }
  0x5c   : > { %s772_s13 = smov %s774_s22  ;;  %18 = sbr.rel (!%p16_p5) target bundleno = 7 (0x7), region = 82 }
  0x61   :  { %261 = vsyncpa [#allocation3], 1 }
  0x62   :  { %263 = vsyncpa [#allocation3 + $0x1], 1 }
  0x63   :  { %264 = vsyncpa [#allocation4], 1 }
  0x64   :  { %266 = vsyncpa [#allocation4 + $0x1], 1 }
  0x65   :  { %267 = vsyncpa [#allocation5], 1 }
  0x66   :  { %269 = vsyncpa [#allocation5 + $0x1], 1 }

</bundles_post_ra>
